<compile_context>
chip_gen: v7x
topology: tpu7x:2x2x1
jax: 0.10.0
libtpu: 0.0.40
codegen_flags: <defaults>
</compile_context>

<pallas_src>
import functools

import jax
import jax.numpy as jnp
from jax.experimental import pallas as pl
from jax.experimental.pallas import tpu as pltpu

# ---- synthetic config (cfg) -------------------------------------------------
CFG = {
    "first_layer": 32,
    "second_layer": 64,
    "third_layer": 32,
    "dropout": 0.3,   # identity in eval mode
}
BN_EPS = 1e-5
PACK = 4              # batch rows packed per lane-row (32 feats * 4 = 128 lanes)
NUM_HEADS = 6         # [sev, int, voix, res, pros, pd]


def _round_up(n, m):
    return ((n + m - 1) // m) * m


def _cdiv(a, b):
    return -(-a // b)


# ---- kernel ------------------------------------------------------------------
def _snn_kernel(x_ref, w1_ref, b1_ref, w2_ref, b2_ref, wh_ref, bh_ref, out_ref):
    # x_ref: (tile, 128) bf16, weights bf16 block-diagonal, biases f32.
    # bn1 folded into (w1, b1); dropout is identity in eval mode.
    h = jnp.dot(x_ref[...], w1_ref[...], preferred_element_type=jnp.float32)
    h = jnp.maximum(h + b1_ref[...], 0.0)                       # f32 (VPU)
    # bn2 folded into (w2, b2)
    h = jnp.dot(h.astype(jnp.bfloat16), w2_ref[...],
                preferred_element_type=jnp.float32)
    h = jnp.maximum(h + b2_ref[...], 0.0)
    # bn3 folded into the fused heads [sev, int, voix, res, pros, pd]
    o = jnp.dot(h.astype(jnp.bfloat16), wh_ref[...],
                preferred_element_type=jnp.float32)
    out_ref[...] = jnp.maximum(o + bh_ref[...], 0.0).astype(out_ref.dtype)


# ---- pallas_call wrapper (operates on packed rows) ---------------------------
@functools.partial(jax.jit, static_argnames=("tile",))
def _snn_forward_packed(xp, pp, tile):
    BP, K1 = xp.shape
    K2 = pp["w1"].shape[1]
    K3 = pp["w2"].shape[1]
    NO = pp["wh"].shape[1]

    grid = (BP // tile,)

    def tiled(i):
        return (i, 0)

    def resident(i):
        return (0, 0)

    return pl.pallas_call(
        _snn_kernel,
        out_shape=jax.ShapeDtypeStruct((BP, NO), jnp.float32),
        grid=grid,
        in_specs=[
            pl.BlockSpec((tile, K1), tiled),      # x (packed, batch tiled, bf16)
            pl.BlockSpec((K1, K2), resident),     # w1 blockdiag (BN1-folded, bf16)
            pl.BlockSpec((1, K2), resident),      # b1 tiled (f32)
            pl.BlockSpec((K2, K3), resident),     # w2 blockdiag (BN2-folded, bf16)
            pl.BlockSpec((1, K3), resident),      # b2 tiled (f32)
            pl.BlockSpec((K3, NO), resident),     # heads blockdiag (BN3-folded, bf16)
            pl.BlockSpec((1, NO), resident),      # head biases tiled (f32)
        ],
        out_specs=pl.BlockSpec((tile, NO), tiled),
        compiler_params=pltpu.CompilerParams(
            dimension_semantics=("parallel",),
            vmem_limit_bytes=48 << 20,            # safe on v7x (64 MiB physical)
        ),
    )(xp, pp["w1"], pp["b1"], pp["w2"], pp["b2"], pp["wh"], pp["bh"])


def snn_forward(x, packed_params, *, tile_rows=2048, pack=PACK):
    """x: (B, first_layer) float32. Returns (SEV, INT, v, r, p, pd), each (B, 1)."""
    B, F1 = x.shape

    # Packed rows needed; choose tile so padding is small (no dead full tiles)
    # and the grid has >=2 steps when there is enough work (v7x: 2 TensorCores).
    bp = max(1, _cdiv(B, pack))
    min_steps = 2 if bp >= 16 else 1
    steps = max(min_steps, _cdiv(bp, tile_rows))
    tile = _round_up(_cdiv(bp, steps), 8)
    bp_pad = steps * tile
    B_pad = bp_pad * pack

    if B_pad != B:
        x = jnp.pad(x, ((0, B_pad - B), (0, 0)))
    # Pack 4 consecutive batch rows into one 128-wide lane-row (bf16 halves DMA).
    xp = x.reshape(bp_pad, pack * F1).astype(jnp.bfloat16)

    out = _snn_forward_packed(xp, packed_params, tile)          # (bp_pad, pack*6)
    out = out.reshape(B_pad, NUM_HEADS)[:B]                     # unpack + drop pad

    # split fused heads back into the PyTorch return order
    SEV = out[:, 0:1]
    INT = out[:, 1:2]
    v = out[:, 2:3]
    r = out[:, 3:4]
    p = out[:, 4:5]
    pd = out[:, 5:6]
    return SEV, INT, v, r, p, pd


# ---- host-side BatchNorm folding + block-diagonal packing --------------------
def fold_and_pack_params(p, pack=PACK):
    """Fold eval-mode BN into adjacent Linears, then build block-diagonal
    (x pack) bf16 weights and lane-tiled f32 biases."""
    w1 = p["bn1_scale"].reshape(-1, 1) * p["w1"]                 # (f1, f2)
    b1 = p["bn1_shift"] @ p["w1"] + p["b1"]                      # (1, f2)
    w2 = p["bn2_scale"].reshape(-1, 1) * p["w2"]                 # (f2, f3)
    b2 = p["bn2_shift"] @ p["w2"] + p["b2"]                      # (1, f3)
    wh = p["bn3_scale"].reshape(-1, 1) * p["w_heads"]            # (f3, 6)
    bh = p["bn3_shift"] @ p["w_heads"] + p["b_heads"]            # (1, 6)

    eye = jnp.eye(pack, dtype=jnp.float32)
    blockdiag = lambda w: jnp.kron(eye, w)
    tile_b = lambda b: jnp.tile(b, (1, pack)).astype(jnp.float32)

    return {
        "w1": blockdiag(w1).astype(jnp.bfloat16),    # (pack*f1, pack*f2)
        "b1": tile_b(b1),                            # (1, pack*f2)
        "w2": blockdiag(w2).astype(jnp.bfloat16),    # (pack*f2, pack*f3)
        "b2": tile_b(b2),                            # (1, pack*f3)
        "wh": blockdiag(wh).astype(jnp.bfloat16),    # (pack*f3, pack*6)
        "bh": tile_b(bh),                            # (1, pack*6)
    }


# ---- deterministic parameter init -------------------------------------------
def init_params(key, cfg):
    f1, f2, f3 = cfg["first_layer"], cfg["second_layer"], cfg["third_layer"]
    ks = jax.random.split(key, 22)

    def linear(kw, kb, fan_in, fan_out):
        bound = 1.0 / jnp.sqrt(fan_in)
        w = jax.random.uniform(kw, (fan_out, fan_in), jnp.float32, -bound, bound)
        b = jax.random.uniform(kb, (fan_out,), jnp.float32, -bound, bound)
        return w, b

    def bn(kg, kb, n):
        # eval-mode BatchNorm1d: running_mean=0, running_var=1
        gamma = 1.0 + 0.1 * jax.random.normal(kg, (n,), jnp.float32)
        beta = 0.1 * jax.random.normal(kb, (n,), jnp.float32)
        mean = jnp.zeros((n,), jnp.float32)
        var = jnp.ones((n,), jnp.float32)
        scale = gamma / jnp.sqrt(var + BN_EPS)
        shift = beta - mean * scale
        return scale.reshape(1, n), shift.reshape(1, n)

    w1, b1 = linear(ks[0], ks[1], f1, f2)
    w2, b2 = linear(ks[2], ks[3], f2, f3)
    # six 1-unit heads, fused column order: [sev, int, voix, res, pros, pd]
    head_ws, head_bs = [], []
    for i in range(6):
        wh, bh = linear(ks[4 + 2 * i], ks[5 + 2 * i], f3, 1)
        head_ws.append(wh)
        head_bs.append(bh)
    w_heads = jnp.concatenate(head_ws, axis=0)     # (6, f3)
    b_heads = jnp.concatenate(head_bs, axis=0)     # (6,)

    bn1_s, bn1_b = bn(ks[16], ks[17], f1)
    bn2_s, bn2_b = bn(ks[18], ks[19], f2)
    bn3_s, bn3_b = bn(ks[20], ks[21], f3)

    return {
        "bn1_scale": bn1_s, "bn1_shift": bn1_b,
        "w1": w1.T, "b1": b1.reshape(1, f2),
        "bn2_scale": bn2_s, "bn2_shift": bn2_b,
        "w2": w2.T, "b2": b2.reshape(1, f3),
        "bn3_scale": bn3_s, "bn3_shift": bn3_b,
        "w_heads": w_heads.T, "b_heads": b_heads.reshape(1, 6),
    }


if __name__ == "__main__":
    key = jax.random.PRNGKey(0)
    k_param, k_x = jax.random.split(key)
    params = init_params(k_param, CFG)
    packed = fold_and_pack_params(params)

    # B deliberately not a multiple of 4 or 8 to exercise pack/pad/multi-tile.
    B = 261
    x = jax.random.normal(k_x, (B, CFG["first_layer"]), jnp.float32)

    outs = snn_forward(x, packed, tile_rows=2048)
    outs = jax.block_until_ready(outs)

    # pure-JAX f32 reference using the ORIGINAL (unfolded) parameters
    def ref(x, p):
        h = x * p["bn1_scale"] + p["bn1_shift"]
        h = jnp.maximum(h @ p["w1"] + p["b1"], 0.0)
        h = h * p["bn2_scale"] + p["bn2_shift"]
        h = jnp.maximum(h @ p["w2"] + p["b2"], 0.0)
        h = h * p["bn3_scale"] + p["bn3_shift"]
        o = jnp.maximum(h @ p["w_heads"] + p["b_heads"], 0.0)
        return tuple(o[:, i:i + 1] for i in range(6))

    refs = ref(x, params)
    for a, b in zip(outs, refs):
        assert a.shape == (B, 1)
        # bf16 matmul operands -> looser tolerance than the f32 reference
        assert jnp.allclose(a, b, atol=5e-2, rtol=5e-2), "mismatch vs reference"

    print("KERNEL_OK")
</pallas_src>

<mosaic_0001>
module attributes {stable_mosaic.version = 11 : i64} {
  func.func @_snn_kernel(%arg0: i32, %arg1: memref<40x128xbf16, #tpu.memory_space<vmem>>, %arg2: memref<128x256xbf16, #tpu.memory_space<vmem>>, %arg3: memref<1x256xf32, #tpu.memory_space<vmem>>, %arg4: memref<256x128xbf16, #tpu.memory_space<vmem>>, %arg5: memref<1x128xf32, #tpu.memory_space<vmem>>, %arg6: memref<128x24xbf16, #tpu.memory_space<vmem>>, %arg7: memref<1x24xf32, #tpu.memory_space<vmem>>, %arg8: memref<40x24xf32, #tpu.memory_space<vmem>>) attributes {dimension_semantics = [#tpu.dimension_semantics<parallel>], iteration_bounds = array<i64: 2>, scalar_prefetch = 0 : i64, scratch_operands = 0 : i64, tpu.core_type = #tpu.core_type<tc>, window_params = [{transform_indices = @transform_0, window_bounds = array<i64: 40, 128>}, {pipeline_mode = #tpu.pipeline_mode<synchronous>, transform_indices = @transform_1, window_bounds = array<i64: 128, 256>}, {pipeline_mode = #tpu.pipeline_mode<synchronous>, transform_indices = @transform_2, window_bounds = array<i64: 1, 256>}, {pipeline_mode = #tpu.pipeline_mode<synchronous>, transform_indices = @transform_3, window_bounds = array<i64: 256, 128>}, {pipeline_mode = #tpu.pipeline_mode<synchronous>, transform_indices = @transform_4, window_bounds = array<i64: 1, 128>}, {pipeline_mode = #tpu.pipeline_mode<synchronous>, transform_indices = @transform_5, window_bounds = array<i64: 128, 24>}, {pipeline_mode = #tpu.pipeline_mode<synchronous>, transform_indices = @transform_6, window_bounds = array<i64: 1, 24>}, {transform_indices = @transform_7, window_bounds = array<i64: 40, 24>}]} {
    %c0 = arith.constant 0 : index
    %c0_0 = arith.constant 0 : index
    %0 = vector.load %arg1[%c0, %c0_0] : memref<40x128xbf16, #tpu.memory_space<vmem>>, vector<40x128xbf16>
    %c0_1 = arith.constant 0 : index
    %c0_2 = arith.constant 0 : index
    %1 = vector.load %arg2[%c0_1, %c0_2] : memref<128x256xbf16, #tpu.memory_space<vmem>>, vector<128x256xbf16>
    %cst = arith.constant dense<0.000000e+00> : vector<40x256xf32>
    %2 = tpu.matmul %0, %1, %cst {dimension_numbers = #tpu.dot_dimension_numbers<[1], [0], [0], [1], [0, 0, 1, 1], [], []>} : vector<40x128xbf16>, vector<128x256xbf16>, vector<40x256xf32> -> vector<40x256xf32>
    %c0_3 = arith.constant 0 : index
    %c0_4 = arith.constant 0 : index
    %3 = vector.load %arg3[%c0_3, %c0_4] : memref<1x256xf32, #tpu.memory_space<vmem>>, vector<1x256xf32>
    %4 = vector.broadcast %3 : vector<1x256xf32> to vector<40x256xf32>
    %5 = arith.addf %2, %4 : vector<40x256xf32>
    %cst_5 = arith.constant 0.000000e+00 : f32
    %6 = vector.broadcast %cst_5 : f32 to vector<40x256xf32>
    %7 = arith.maximumf %5, %6 : vector<40x256xf32>
    %8 = arith.truncf %7 : vector<40x256xf32> to vector<40x256xbf16>
    %c0_6 = arith.constant 0 : index
    %c0_7 = arith.constant 0 : index
    %9 = vector.load %arg4[%c0_6, %c0_7] : memref<256x128xbf16, #tpu.memory_space<vmem>>, vector<256x128xbf16>
    %cst_8 = arith.constant dense<0.000000e+00> : vector<40x128xf32>
    %10 = tpu.matmul %8, %9, %cst_8 {dimension_numbers = #tpu.dot_dimension_numbers<[1], [0], [0], [1], [0, 0, 1, 1], [], []>} : vector<40x256xbf16>, vector<256x128xbf16>, vector<40x128xf32> -> vector<40x128xf32>
    %c0_9 = arith.constant 0 : index
    %c0_10 = arith.constant 0 : index
    %11 = vector.load %arg5[%c0_9, %c0_10] : memref<1x128xf32, #tpu.memory_space<vmem>>, vector<1x128xf32>
    %12 = vector.broadcast %11 : vector<1x128xf32> to vector<40x128xf32>
    %13 = arith.addf %10, %12 : vector<40x128xf32>
    %cst_11 = arith.constant 0.000000e+00 : f32
    %14 = vector.broadcast %cst_11 : f32 to vector<40x128xf32>
    %15 = arith.maximumf %13, %14 : vector<40x128xf32>
    %16 = arith.truncf %15 : vector<40x128xf32> to vector<40x128xbf16>
    %c0_12 = arith.constant 0 : index
    %c0_13 = arith.constant 0 : index
    %17 = vector.load %arg6[%c0_12, %c0_13] : memref<128x24xbf16, #tpu.memory_space<vmem>>, vector<128x24xbf16>
    %cst_14 = arith.constant dense<0.000000e+00> : vector<40x24xf32>
    %18 = tpu.matmul %16, %17, %cst_14 {dimension_numbers = #tpu.dot_dimension_numbers<[1], [0], [0], [1], [0, 0, 1, 1], [], []>} : vector<40x128xbf16>, vector<128x24xbf16>, vector<40x24xf32> -> vector<40x24xf32>
    %c0_15 = arith.constant 0 : index
    %c0_16 = arith.constant 0 : index
    %19 = vector.load %arg7[%c0_15, %c0_16] : memref<1x24xf32, #tpu.memory_space<vmem>>, vector<1x24xf32>
    %20 = vector.broadcast %19 : vector<1x24xf32> to vector<40x24xf32>
    %21 = arith.addf %18, %20 : vector<40x24xf32>
    %cst_17 = arith.constant 0.000000e+00 : f32
    %22 = vector.broadcast %cst_17 : f32 to vector<40x24xf32>
    %23 = arith.maximumf %21, %22 : vector<40x24xf32>
    %c0_18 = arith.constant 0 : index
    %c0_19 = arith.constant 0 : index
    %24 = vector.load %arg8[%c0_18, %c0_19] : memref<40x24xf32, #tpu.memory_space<vmem>>, vector<40x24xf32>
    tpu.vector_store %arg8[%c0_18, %c0_19], %23 {strides = array<i32>} : memref<40x24xf32, #tpu.memory_space<vmem>>, vector<40x24xf32>,
    return
  }
  func.func @transform_0(%arg0: i32) -> (i32, i32) {
    %c0_i32 = arith.constant 0 : i32
    %c0_i32_0 = arith.constant 0 : i32
    return %arg0, %c0_i32 : i32, i32
  }
  func.func @transform_1(%arg0: i32) -> (i32, i32) {
    %c0_i32 = arith.constant 0 : i32
    %c0_i32_0 = arith.constant 0 : i32
    %c0_i32_1 = arith.constant 0 : i32
    return %c0_i32, %c0_i32_0 : i32, i32
  }
  func.func @transform_2(%arg0: i32) -> (i32, i32) {
    %c0_i32 = arith.constant 0 : i32
    %c0_i32_0 = arith.constant 0 : i32
    %c0_i32_1 = arith.constant 0 : i32
    return %c0_i32, %c0_i32_0 : i32, i32
  }
  func.func @transform_3(%arg0: i32) -> (i32, i32) {
    %c0_i32 = arith.constant 0 : i32
    %c0_i32_0 = arith.constant 0 : i32
    %c0_i32_1 = arith.constant 0 : i32
    return %c0_i32, %c0_i32_0 : i32, i32
  }
  func.func @transform_4(%arg0: i32) -> (i32, i32) {
    %c0_i32 = arith.constant 0 : i32
    %c0_i32_0 = arith.constant 0 : i32
    %c0_i32_1 = arith.constant 0 : i32
    return %c0_i32, %c0_i32_0 : i32, i32
  }
  func.func @transform_5(%arg0: i32) -> (i32, i32) {
    %c0_i32 = arith.constant 0 : i32
    %c0_i32_0 = arith.constant 0 : i32
    %c0_i32_1 = arith.constant 0 : i32
    return %c0_i32, %c0_i32_0 : i32, i32
  }
  func.func @transform_6(%arg0: i32) -> (i32, i32) {
    %c0_i32 = arith.constant 0 : i32
    %c0_i32_0 = arith.constant 0 : i32
    %c0_i32_1 = arith.constant 0 : i32
    return %c0_i32, %c0_i32_0 : i32, i32
  }
  func.func @transform_7(%arg0: i32) -> (i32, i32) {
    %c0_i32 = arith.constant 0 : i32
    %c0_i32_0 = arith.constant 0 : i32
    return %arg0, %c0_i32 : i32, i32
  }
}

</mosaic_0001>

<bundles_post_ra>
// kernel: _snn_forward_packed.1
= control target key start
LH: loop header
LB: loop body
LE: loop exit
PB: predicated region body
PF: predicated region fallthrough
CT: control target
= control target key end

     0   :  { %12 = vsyncpa [#allocation3], 0  ;;  %s1457_s0 = inlined_call_operand.vmem [shape: bf16[80,128], index: 0, kind: input, shape index: {}]   ;;  %s1458_s1 = inlined_call_operand.hbm [shape: bf16[128,256], index: 1, kind: input, shape index: {}]   ;;  %s1459_s2 = inlined_call_operand.vmem [shape: f32[1,256], index: 2, kind: input, shape index: {}]   ;;  %s1460_s3 = inlined_call_operand.hbm [shape: bf16[256,128], index: 3, kind: input, shape index: {}]   ;;  %s1461_s4 = inlined_call_operand.vmem [shape: f32[1,128], index: 4, kind: input, shape index: {}]   ;;  %s1462_s5 = inlined_call_operand.vmem [shape: bf16[128,24], index: 5, kind: input, shape index: {}]   ;;  %s1463_s6 = inlined_call_operand.vmem [shape: f32[1,24], index: 6, kind: input, shape index: {}]   ;;  %s1464_s7 = inlined_call_operand.vmem [shape: f32[80,24], index: 7, kind: output, shape index: {}]  }
   0x1   :  { %13 = vsyncpa [#allocation5], 0  ;;  %s1289_s24 = smov 0  }
   0x2 LB: > { %s1240_s25 = smov [#allocation2]   ;;  %s934_s27 = sadd.s32 4294967295, %s1238_s24   ;;  %s1238_s24 = sphi %s1289_s24, %s19_s24  }
   0x3   : > { %s214_s26 = sshll.u32 %s1240_s25, 4  ;;  %p936_p0 = scmp.ge.s32.totalorder %s1238_s24, 1  ;;  %s215_s26 = int_to_ptr.vmem [resolvable:$true] %s214_s26 }
   0x4   : > { %p202_p1 = scmp.lt.s32.totalorder %s1238_s24, 3  ;;  %p1303_p3 = scmp.eq.s32.totalorder %s934_s27, 0 }
   0x5   : > { %s1241_s30 = smov [#allocation4]   ;;  %s1168_s12 = scalar_lea.hbm %s1458_s1, 2048 }
   0x6   : > { %p1297_p2 = pnand %p936_p0, %p202_p1  ;;  %s230_s8 = sshll.u32 %s1241_s30, 4  ;;  %s1315_s8 = int_to_ptr.vmem [resolvable:$true] %s230_s8 }
   0x7   : > { %s1469_s29 = scalar_select %p1303_p3, 1, 0 }
   0x8   : > { %s1468_s28 = scalar_select %p1297_p2, 1, 0 }
   0x9   : > { %p1089_p4 = pneg %p1297_p2  ;;  %p1169_p6 = scmp.ne.s32.totalorder %s1458_s1, %s1168_s12 }
   0xa   : > { %p1175_p10 = scmp.lt.u32.totalorder %s1168_s12, %s1458_s1 }
   0xb   : > { %p1311_p5 = pnand %p1303_p3, %p1089_p4 }
   0xd   : > { %p1170_p7 = pneg %p1311_p5 }
   0xf   : > { %p1171_p8 = pnand %p1170_p7, %p1169_p6 }
  0x11   : > { %p1172_p9 = pneg %p1171_p8 }
  0x13   : > { %p1177_p11 = pnand %p1175_p10, %p1172_p9 }
  0x15   : > { %1180 = shalt.err (!%p1177_p11)
}
  0x16   : > { %s1181_s17 = scalar_lea.vmem %s215_s26, 2048  ;;  %p1189_p1 = scmp.lt.s32.totalorder %s215_s26, %s215_s26 }
  0x17   : > { %p1182_p12 = scmp.ne.s32.totalorder %s215_s26, %s1181_s17  ;;  %p1190_p4 = scmp.lt.s32.totalorder %s1181_s17, %s1181_s17 }
  0x19   : > { %p1184_p13 = pnand %p1182_p12, %p1170_p7  ;;  %p1191_p3 = por %p1190_p4, %p1189_p1 }
  0x1b   : > { %p1185_p0 = pneg %p1184_p13 }
  0x1d   : > { %p1192_p2 = pnand %p1191_p3, %p1185_p0 }
  0x1f   : > { %1195 = shalt.err (!%p1192_p2)
}
  0x20   : > { %s1242_s18 = smov 128   ;;  %s1243_s19 = smov 8  }
  0x21   : > { %1092 = dma.hbm_to_vmem [thread:$0]  (!%p1311_p5), %s1458_s1, 2048, %s215_s26, [#allocation3], %s1242_s18, %s1242_s18, %s1243_s19  }
  0x22   : > { %s1196_s25 = scalar_lea.hbm %s1460_s3, 2048 }
  0x23   : > { %p1197_p6 = scmp.ne.s32.totalorder %s1460_s3, %s1196_s25  ;;  %p1203_p8 = scmp.lt.u32.totalorder %s1196_s25, %s1460_s3 }
  0x25   : > { %p1199_p2 = pnand %p1197_p6, %p1170_p7 }
  0x27   : > { %p1200_p3 = pneg %p1199_p2 }
  0x29   : > { %p1205_p9 = pnand %p1203_p8, %p1200_p3 }
  0x2b   : > { %1208 = shalt.err (!%p1205_p9)
}
  0x2c   : > { %s1209_s26 = scalar_lea.vmem %s1315_s8, 2048  ;;  %p1217_p13 = scmp.lt.s32.totalorder %s1315_s8, %s1315_s8 }
  0x2d   : > { %p1210_p10 = scmp.ne.s32.totalorder %s1315_s8, %s1209_s26  ;;  %p1218_p0 = scmp.lt.s32.totalorder %s1209_s26, %s1209_s26 }
  0x2f   : > { %p1212_p11 = pnand %p1210_p10, %p1170_p7  ;;  %p1219_p1 = por %p1218_p0, %p1217_p13 }
  0x31   : > { %p1213_p12 = pneg %p1212_p11 }
  0x33   : > { %p1220_p4 = pnand %p1219_p1, %p1213_p12 }
  0x35   : > { %1223 = shalt.err (!%p1220_p4)
}
  0x36   : > { %s1244_s13 = smov 64   ;;  %s1245_s14 = smov 4  }
  0x37   : > { %1095 = dma.hbm_to_vmem [thread:$0]  (!%p1311_p5), %s1460_s3, 2048, %s1315_s8, [#allocation5], %s1244_s13, %s1244_s13, %s1245_s14  }
  0x38   : > { %p1471_p6 = scmp.ne.s32.totalorder %s1468_s28, 0 }
  0x39   : > { %p1472_p7 = scmp.ne.s32.totalorder (!%p1471_p6), %s1469_s29, 0 }
  0x3a   : > { %264 = sbr.rel (%p1471_p6) target bundleno = 779 (0x30b), region = 48 }
  0x41   : > { %1229 = dma.done.wait (%p1472_p7), [#allocation3], 2048  }
  0x42   : > { %1231 = vsyncadd (%p1472_p7), [#allocation3], 4294965248 }
  0x43   : > { %1233 = dma.done.wait (%p1472_p7), [#allocation5], 2048  }
  0x44   : > { %1235 = vsyncadd (%p1472_p7), [#allocation5], 4294965248  ;;  %v1246_v0 = vmov 0   ;;  %s300_s8 = smul.u32 5, %s934_s27  ;;  %v1117_v1 = vld [vmem:[#allocation2 + $0x4] ss:$8 sps:$4 sm:$0xff]   ;;  %v336_v42 = vlaneseq }
  0x45   : > { %474 = vmatprep.mubr.bf16.mxu0 %v1246_v0  ;;  %v1119_v2 = vld [vmem:[#allocation2] ss:$8 sps:$4 sm:$0xff]   ;;  %442 = vmatprep.subr.bf16.mxu0 %v1117_v1  ;;  %v1120_v3 = vld [vmem:[#allocation2 + $0x14] ss:$8 sps:$4 sm:$0xff]   ;;  %v1122_v4 = vld [vmem:[#allocation2 + $0x10] ss:$8 sps:$4 sm:$0xff]  }
  0x46   : > { %p301_p5 = scmp.lt.s32.totalorder %s300_s8, 9  ;;  %443 = vmatpush1.bf16.msra.mxu0 %v1119_v2  ;;  %v1123_v5 = vld [vmem:[#allocation2 + $0x24] ss:$8 sps:$4 sm:$0xff]   ;;  %v1125_v6 = vld [vmem:[#allocation2 + $0x20] ss:$8 sps:$4 sm:$0xff]   ;;  %v1148_v16 = vld [vmem:[#allocation4 + $0x50] sm:$0xff]  }
  0x47   : > { %444 = vmatprep.subr.bf16.mxu0 %v1120_v3  ;;  %v1126_v7 = vld [vmem:[#allocation2 + $0x34] ss:$8 sps:$4 sm:$0xff]   ;;  %v1128_v8 = vld [vmem:[#allocation2 + $0x30] ss:$8 sps:$4 sm:$0xff]   ;;  %v1129_v9 = vld [vmem:[#allocation2 + $0x44] ss:$8 sps:$4 sm:$0xff]  }
  0x48   : > { %s1474_s8 = smov (!%p301_p5, %s300_s8), 9  ;;  %v1131_v10 = vld [vmem:[#allocation2 + $0x40] ss:$8 sps:$4 sm:$0xff]   ;;  %v1132_v11 = vld [vmem:[#allocation2 + $0x54] ss:$8 sps:$4 sm:$0xff]   ;;  %v1247_v37 = vmov 0.0  }
  0x49   : > { %s943_s28 = sshll.u32 %s1474_s8, 2  ;;  %v1144_v12 = vld [vmem:[#allocation4 + $0x40] sm:$0xff]   ;;  %v1146_v14 = vld [vmem:[#allocation4 + $0x48] sm:$0xff]   ;;  %v1134_v17 = vld [vmem:[#allocation2 + $0x50] ss:$8 sps:$4 sm:$0xff]   ;;  %v337_v43 = vshrl.u32 %v336_v42, 7 }
  0x4a   : > { %445 = vmatpush1.bf16.msra.mxu0 %v1122_v4  ;;  %s1383_s27 = scalar_lea.vmem %s1457_s0, %s943_s28  ;;  %v1145_v13 = vld [vmem:[#allocation4] sm:$0xff]   ;;  %992 = vmatprep.subr.bf16.mxu1 %v1144_v12  ;;  %v1147_v15 = vld [vmem:[#allocation4 + $0x8] sm:$0xff]   ;;  %v1149_v20 = vld [vmem:[#allocation4 + $0x10] sm:$0xff]   ;;  %vm1248_vm0 = vmmov 0   ;;  %s944_s18 = sshll.u32 %s1474_s8, 3  ;;  %vm850_vm1 = vcmask 195584  }
  0x4b   : > { %446 = vmatprep.subr.bf16.mxu0 %v1123_v5  ;;  %993 = vmatpush3.bf16.msra.mxu1 %v1145_v13  ;;  %v1135_v18 = vld [vmem:[#allocation2 + $0x64] ss:$8 sps:$4 sm:$0xff]   ;;  %v1137_v19 = vld [vmem:[#allocation2 + $0x60] ss:$8 sps:$4 sm:$0xff]   ;;  %v1150_v21 = vld [vmem:[#allocation4 + $0x58] sm:$0xff]   ;;  %v338_v44 = vsub.s32 0, %v337_v43  ;;  %s310_s21 = scalar_lea.vmem %s1464_s7, %s944_s18 }
  0x4c   : > { %994 = vmatprep.subr.bf16.mxu1 %v1146_v14  ;;  %v1138_v22 = vld [vmem:[#allocation2 + $0x74] ss:$8 sps:$4 sm:$0xff]   ;;  %v1152_v24 = vld [vmem:[#allocation4 + $0x60] sm:$0xff]   ;;  %v1140_v25 = vld [vmem:[#allocation2 + $0x70] ss:$8 sps:$4 sm:$0xff]   ;;  %v342_v46 = vsub.s32 1, %v337_v43 }
  0x4d   : > { %v1151_v23 = vld [vmem:[#allocation4 + $0x18] sm:$0xff]   ;;  %v1153_v26 = vld [vmem:[#allocation4 + $0x20] sm:$0xff]   ;;  %v1154_v28 = vld [vmem:[#allocation4 + $0x68] sm:$0xff]  }
  0x4e   : > { %447 = vmatpush1.bf16.msra.mxu0 %v1125_v6  ;;  %v1141_v27 = vld [vmem:[%s1383_s27] sm:$0xff]   ;;  %v1142_v29 = vld [vmem:[%s1383_s27 + $0x8] sm:$0xff]   ;;  %v1143_v30 = vld [vmem:[%s1383_s27 + $0x10] ss:$0 sps:$4 sm:$0xff]  }
  0x4f   : > { %448 = vmatprep.subr.bf16.mxu0 %v1126_v7  ;;  %995 = vmatpush3.bf16.msra.mxu1 %v1147_v15  ;;  %v1155_v31 = vld [vmem:[#allocation4 + $0x28] sm:$0xff]   ;;  %v1156_v32 = vld [vmem:[#allocation4 + $0x70] sm:$0xff]   ;;  %v1158_v34 = vld [vmem:[#allocation4 + $0x78] sm:$0xff]  }
  0x50   : > { %996 = vmatprep.subr.bf16.mxu1 %v1148_v16  ;;  %v1157_v33 = vld [vmem:[#allocation4 + $0x30] sm:$0xff]   ;;  %v1159_v35 = vld [vmem:[#allocation4 + $0x38] sm:$0xff]   ;;  %v1160_v36 = vld [vmem:[%s1462_s5] sm:$0xff]  }
  0x51   : > { %v1161_v38 = vld [vmem:[%s1462_s5 + $0x8] sm:$0xff]   ;;  %v1162_v39 = vld [vmem:[%s1462_s5 + $0x10] sm:$0xff]   ;;  %v1163_v40 = vld [vmem:[%s1462_s5 + $0x18] sm:$0xff]  }
  0x52   : > { %449 = vmatpush1.bf16.msra.mxu0 %v1128_v8  ;;  %v1164_v41 = vld [vmem:[%s1462_s5 + $0x20] sm:$0xff]  }
  0x53   : > { %450 = vmatprep.subr.bf16.mxu0 %v1129_v9  ;;  %997 = vmatpush3.bf16.msra.mxu1 %v1149_v20  ;;  %v334_v45 = vld [vmem:[%s1459_s2] sm:$0x3] }
  0x54   : > { %998 = vmatprep.subr.bf16.mxu1 %v1150_v21  ;;  %v339_v47 = vrot.slane %v334_v45, %v338_v44  ;;  %v343_v48 = vrot.slane %v334_v45, %v342_v46 }
  0x56   : > { %451 = vmatpush1.bf16.msra.mxu0 %v1131_v10 }
  0x57   : > { %452 = vmatprep.subr.bf16.mxu0 %v1132_v11  ;;  %999 = vmatpush3.bf16.msra.mxu1 %v1151_v23  ;;  %v1165_v23 = vld [vmem:[%s1462_s5 + $0x28] sm:$0xff]  }
  0x58   : > { %1000 = vmatprep.subr.bf16.mxu1 %v1152_v24  ;;  %v1166_v24 = vld [vmem:[%s1462_s5 + $0x30] sm:$0xff]  }
  0x5a   : > { %453 = vmatpush1.bf16.msra.mxu0 %v1134_v17 }
  0x5b   : > { %454 = vmatprep.subr.bf16.mxu0 %v1135_v18  ;;  %1001 = vmatpush3.bf16.msra.mxu1 %v1153_v26 }
  0x5c   : > { %1002 = vmatprep.subr.bf16.mxu1 %v1154_v28 }
  0x5e   : > { %455 = vmatpush1.bf16.msra.mxu0 %v1137_v19 }
  0x5f   : > { %456 = vmatprep.subr.bf16.mxu0 %v1138_v22  ;;  %1003 = vmatpush3.bf16.msra.mxu1 %v1155_v31 }
  0x60   : > { %1004 = vmatprep.subr.bf16.mxu1 %v1156_v32 }
  0x62   : > { %457 = vmatpush1.bf16.msra.mxu0 %v1140_v25  ;;  %v1167_v25 = vld [vmem:[%s1462_s5 + $0x38] sm:$0xff]  }
  0x63   : > { %1005 = vmatpush3.bf16.msra.mxu1 %v1157_v33  ;;  %1037 = vmatprep.subr.bf16.mxu0 %v1247_v37 }
  0x64   : > { %1006 = vmatprep.subr.bf16.mxu1 %v1158_v34 }
  0x65   : > { %475 = vmatmul.mubr.bf16.vlgmr.msra.gmra.mrb[0].mxu0 %v1141_v27  ;;  %v964_v27 = vld [vmem:[%s1461_s4] ss:$0 sm:$0xff] }
  0x66   : > { %484 = vmatprep.mubr.bf16.mxu0 %v1246_v0  ;;  %1038 = vmatpush3.bf16.msra.mxu0 %v1160_v36 }
  0x67   : > { %1007 = vmatpush3.bf16.msra.mxu1 %v1159_v35  ;;  %1039 = vmatprep.subr.bf16.mxu0 %v1247_v37 }
  0x68   : > { %1065 = vmatprep.subr.bf16.mxu1 %v1247_v37 }
  0x6a   : > { %1040 = vmatpush3.bf16.msra.mxu0 %v1161_v38 }
  0x6b   : > { %1041 = vmatprep.subr.bf16.mxu0 %v1247_v37 }
  0x6d   : > { %485 = vmatmul.mubr.bf16.gmra.mrb[4].mxu0 %v1142_v29 }
  0x6e   : > { %494 = vmatprep.mubr.bf16.mxu0 %v1246_v0  ;;  %1042 = vmatpush3.bf16.msra.mxu0 %v1162_v39 }
  0x6f   : > { %1043 = vmatprep.subr.bf16.mxu0 %v1247_v37 }
  0x72   : > { %1044 = vmatpush3.bf16.msra.mxu0 %v1163_v40 }
  0x73   : > { %1045 = vmatprep.subr.bf16.mxu0 %v1247_v37 }
  0x75   : > { %495 = vmatmul.mubr.bf16.gmra.mrb[8].mxu0 %v1143_v30 }
  0x76   : > { %1046 = vmatpush3.bf16.msra.mxu0 %v1164_v41  ;;  %1053 = vmatprep.mubr.msk.bf16.mxu0 %vm1248_vm0, %v1247_v37 }
  0x77   : > { %1047 = vmatprep.subr.bf16.mxu0 %v1247_v37 }
  0x7a   : > { %1048 = vmatpush3.bf16.msra.mxu0 %v1165_v23 }
  0x7b   : > { %1049 = vmatprep.subr.bf16.mxu0 %v1247_v37 }
  0x7e   : > { %1050 = vmatpush3.bf16.msra.mxu0 %v1166_v24 }
  0x7f   : > { %1051 = vmatprep.subr.bf16.mxu0 %v1247_v37 }
  0x82   : > { %1052 = vmatpush3.bf16.msra.mxu0 %v1167_v25 }
 0x138   : > { %v476_v49 = vpop.f32.mrb[0].mxu0 }
 0x139   : > { %v477_v50 = vadd.f32 %v476_v49, %v339_v47  ;;  %v478_v51 = vpop.f32.mrb[1].mxu0 }
 0x13a   : > { %v479_v52 = vadd.f32 %v478_v51, %v343_v48  ;;  %v480_v53 = vpop.f32.mrb[2].mxu0 }
 0x13b   : > { %v481_v54 = vadd.f32 %v480_v53, %v339_v47  ;;  %v482_v55 = vpop.f32.mrb[3].mxu0  ;;  %v503_v57 = vmax.f32 %v477_v50, 0.0 }
 0x13c   : > { %v483_v56 = vadd.f32 %v482_v55, %v343_v48  ;;  %v504_v59 = vmax.f32 %v479_v52, 0.0 }
 0x13d   : > { %v505_v58 = vmax.f32 %v481_v54, 0.0 }
 0x13e   : > { %v506_v60 = vmax.f32 %v483_v56, 0.0 }
 0x13f   : > { %v513_v61 = vpack.c.bf16 %v505_v58, %v503_v57  ;;  %v981_v58 = vld [vmem:[%s1463_s6] ss:$0 sm:$0xff] }
 0x140   : > { %v486_v62 = vpop.f32.mrb[4].mxu0  ;;  %v514_v63 = vpack.c.bf16 %v506_v60, %v504_v59 }
 0x141   : > { %v487_v0 = vadd.f32 %v486_v62, %v339_v47  ;;  %v488_v1 = vpop.f32.mrb[5].mxu0 }
 0x142   : > { %v489_v2 = vadd.f32 %v488_v1, %v343_v48  ;;  %v490_v3 = vpop.f32.mrb[6].mxu0  ;;  %686 = vmatprep.mubr.bf16.mxu1 %v514_v63 }
 0x143   : > { %v491_v4 = vadd.f32 %v490_v3, %v339_v47  ;;  %v492_v5 = vpop.f32.mrb[7].mxu0  ;;  %687 = vmatmul.mubr.bf16.vlgmr.msra.gmra.mrb[0].mxu1 %v513_v61  ;;  %v507_v7 = vmax.f32 %v487_v0, 0.0 }
 0x144   : > { %v493_v6 = vadd.f32 %v492_v5, %v343_v48  ;;  %1073 = vmatpush3.bf16.msra.mxu1 %v1160_v36  ;;  %v508_v9 = vmax.f32 %v489_v2, 0.0 }
 0x145   : > { %v509_v8 = vmax.f32 %v491_v4, 0.0  ;;  %1066 = vmatprep.subr.bf16.mxu1 %v1247_v37 }
 0x146   : > { %v510_v10 = vmax.f32 %v493_v6, 0.0 }
 0x147   : > { %v515_v11 = vpack.c.bf16 %v509_v8, %v507_v7 }
 0x148   : > { %v516_v12 = vpack.c.bf16 %v510_v10, %v508_v9  ;;  %v496_v13 = vpop.f32.mrb[8].mxu0  ;;  %1074 = vmatpush3.bf16.msra.mxu1 %v1161_v38 }
 0x149   : > { %v497_v14 = vadd.f32 %v496_v13, %v339_v47  ;;  %v498_v15 = vpop.f32.mrb[9].mxu0  ;;  %1067 = vmatprep.subr.bf16.mxu1 %v1247_v37 }
 0x14a   : > { %v499_v16 = vadd.f32 %v498_v15, %v343_v48  ;;  %694 = vmatprep.mubr.bf16.mxu1 %v516_v12  ;;  %v500_v17 = vpop.f32.mrb[10].mxu0 }
 0x14b   : > { %v511_v18 = vmax.f32 %v497_v14, 0.0  ;;  %695 = vmatmul.mubr.bf16.gmra.mrb[4].mxu1 %v515_v11  ;;  %v501_v19 = vpop.f32.mrb[11].mxu0 }
 0x14c   : > { %v512_v20 = vmax.f32 %v499_v16, 0.0  ;;  %1075 = vmatpush3.bf16.msra.mxu1 %v1162_v39 }
 0x14d   : > { %1068 = vmatprep.subr.bf16.mxu1 %v1247_v37  ;;  %v517_v22 = vpack.c.bf16 %v511_v18, %v511_v18 }
 0x14e   : > { %v518_v21 = vpack.c.bf16 %v512_v20, %v512_v20 }
 0x150   : > { %702 = vmatprep.mubr.bf16.mxu1 %v518_v21  ;;  %1076 = vmatpush3.bf16.msra.mxu1 %v1163_v40 }
 0x151   : > { %1069 = vmatprep.subr.bf16.mxu1 %v1247_v37 }
 0x153   : > { %703 = vmatmul.mubr.bf16.gmra.mrb[8].mxu1 %v517_v22 }
 0x154   : > { %1077 = vmatpush3.bf16.msra.mxu1 %v1164_v41  ;;  %1057 = vmatprep.mubr.msk.bf16.mxu1 %vm1248_vm0, %v1247_v37 }
 0x155   : > { %1070 = vmatprep.subr.bf16.mxu1 %v1247_v37 }
 0x158   : > { %1078 = vmatpush3.bf16.msra.mxu1 %v1165_v23 }
 0x159   : > { %1071 = vmatprep.subr.bf16.mxu1 %v1247_v37 }
 0x15c   : > { %1079 = vmatpush3.bf16.msra.mxu1 %v1166_v24 }
 0x15d   : > { %1072 = vmatprep.subr.bf16.mxu1 %v1247_v37 }
 0x160   : > { %1080 = vmatpush3.bf16.msra.mxu1 %v1167_v25 }
 0x216   : > { %v1008_v26 = vpop.f32.mrb[0].mxu1 }
 0x217   : > { %v1009_v28 = vpop.f32.mrb[1].mxu1 }
 0x218   : > { %v1010_v29 = vadd.f32 %v1009_v28, %v1008_v26  ;;  %v1011_v30 = vpop.f32.mrb[2].mxu1 }
 0x219   : > { %v1012_v31 = vpop.f32.mrb[3].mxu1 }
 0x21a   : > { %v689_v32 = vadd.f32 %v1010_v29, %v964_v27  ;;  %v1013_v33 = vadd.f32 %v1012_v31, %v1011_v30 }
 0x21c   : > { %v692_v34 = vadd.f32 %v1013_v33, %v964_v27  ;;  %v710_v35 = vmax.f32 %v689_v32, 0.0 }
 0x21e   : > { %v711_v36 = vmax.f32 %v692_v34, 0.0  ;;  %v1014_v38 = vpop.f32.mrb[4].mxu1 }
 0x21f   : > { %v1015_v39 = vpop.f32.mrb[5].mxu1 }
 0x220   : > { %v715_v40 = vpack.c.bf16 %v711_v36, %v710_v35  ;;  %v1016_v41 = vadd.f32 %v1015_v39, %v1014_v38  ;;  %v1017_v42 = vpop.f32.mrb[6].mxu1 }
 0x221   : > { %v1018_v43 = vpop.f32.mrb[7].mxu1 }
 0x222   : > { %v697_v44 = vadd.f32 %v1016_v41, %v964_v27  ;;  %v1019_v45 = vadd.f32 %v1018_v43, %v1017_v42  ;;  %1054 = vmatmul.mubr.bf16.vlgmr.msra.gmra.mrb[12].mxu0 %v715_v40 }
 0x224   : > { %v700_v46 = vadd.f32 %v1019_v45, %v964_v27  ;;  %v712_v47 = vmax.f32 %v697_v44, 0.0 }
 0x226   : > { %v713_v48 = vmax.f32 %v700_v46, 0.0  ;;  %v1020_v49 = vpop.f32.mrb[8].mxu1 }
 0x227   : > { %v1021_v50 = vpop.f32.mrb[9].mxu1 }
 0x228   : > { %v716_v51 = vpack.c.bf16 %v713_v48, %v712_v47  ;;  %v1022_v52 = vadd.f32 %v1021_v50, %v1020_v49  ;;  %v1023_v53 = vpop.f32.mrb[10].mxu1 }
 0x229   : > { %v1024_v54 = vpop.f32.mrb[11].mxu1 }
 0x22a   : > { %v705_v55 = vadd.f32 %v1022_v52, %v964_v27  ;;  %1058 = vmatmul.mubr.bf16.vlgmr.msra.gmra.mrb[12].mxu1 %v716_v51 }
 0x22b   : > { %1061 = vmatprep.mubr.msk.bf16.mxu1 %vm1248_vm0, %v1247_v37 }
 0x22c   : > { %v714_v56 = vmax.f32 %v705_v55, 0.0 }
 0x22e   : > { %v717_v57 = vpack.c.bf16 %v714_v56, %v714_v56 }
 0x232   : > { %1062 = vmatmul.mubr.bf16.gmra.mrb[16].mxu1 %v717_v57 }
 0x2f5   : > { %v823_v59 = vpop.f32.mrb[12].mxu0 }
 0x2f6   : > { %v824_v60 = vadd.f32 %v981_v58, %v823_v59  ;;  %v1055_v61 = vpop.f32.mrb[13].mxu0 }
 0x2f7   : > { %v826_v62 = vpop.f32.mrb[14].mxu0 }
 0x2f8   : > { %v845_v63 = vmax.f32 %v824_v60, 0.0  ;;  %v827_v0 = vadd.f32 %v981_v58, %v826_v62  ;;  %v1056_v37 = vpop.f32.mrb[15].mxu0 }
 0x2fa   : > { %851 = vst.msk [vmem:[%s310_s21] sm:$0xff] %vm850_vm1, %v845_v63  ;;  %v846_v1 = vmax.f32 %v827_v0, 0.0 }
 0x2fc   : > { %852 = vst.msk [vmem:[%s310_s21 + $0x8] sm:$0xff] %vm850_vm1, %v846_v1 }
 0x2fd   : > { %v831_v2 = vpop.f32.mrb[12].mxu1 }
 0x2fe   : > { %v832_v3 = vadd.f32 %v981_v58, %v831_v2  ;;  %v1059_v4 = vpop.f32.mrb[13].mxu1 }
 0x2ff   : > { %v834_v5 = vpop.f32.mrb[14].mxu1 }
 0x300   : > { %v847_v6 = vmax.f32 %v832_v3, 0.0  ;;  %v835_v7 = vadd.f32 %v981_v58, %v834_v5  ;;  %v1060_v8 = vpop.f32.mrb[15].mxu1 }
 0x302   : > { %853 = vst.msk [vmem:[%s310_s21 + $0x10] sm:$0xff] %vm850_vm1, %v847_v6  ;;  %v848_v9 = vmax.f32 %v835_v7, 0.0 }
 0x304   : > { %854 = vst.msk [vmem:[%s310_s21 + $0x18] sm:$0xff] %vm850_vm1, %v848_v9 }
 0x305   : > { %v839_v10 = vpop.f32.mrb[16].mxu1 }
 0x306   : > { %v840_v11 = vadd.f32 %v981_v58, %v839_v10  ;;  %v1063_v12 = vpop.f32.mrb[17].mxu1 }
 0x307   : > { %v842_v13 = vpop.f32.mrb[18].mxu1 }
 0x308   : > { %v849_v14 = vmax.f32 %v840_v11, 0.0  ;;  %v1064_v15 = vpop.f32.mrb[19].mxu1 }
 0x30a   : > { %855 = vst.msk [vmem:[%s310_s21 + $0x20] sm:$0xff] %vm850_vm1, %v849_v14 }
 0x30b PF: > { %s19_s24 = sadd.s32 1, %s1238_s24  }
 0x30c   : > { %p16_p2 = scmp.ge.s32.totalorder %s19_s24, 4  }
 0x30e   :  { %18 = sbr.rel (!%p16_p2) target bundleno = 2 (0x2), region = 87 }
 0x315   :  { %878 = vsyncpa [#allocation3], 1 }
 0x316   :  { %880 = vsyncpa [#allocation3 + $0x1], 1 }
 0x317   :  { %881 = vsyncpa [#allocation5], 1 }

</bundles_post_ra>
